<compile_context>
chip_gen: v7x
topology: tpu7x:2x2x1
jax: 0.10.0
libtpu: 0.0.40
codegen_flags: <defaults>
</compile_context>

<pallas_src>
import functools

import jax
import jax.numpy as jnp
from jax.experimental import pallas as pl
from jax.experimental.pallas import tpu as pltpu


def _round_up(x, m):
    return ((x + m - 1) // m) * m


# ---------------------------------------------------------------------------
# Fused MLP kernel: all layers in one kernel; the activation never leaves VMEM
# ---------------------------------------------------------------------------
def _fused_mlp_kernel(x_ref, wf_ref, bf_ref, wm_ref, bm_ref, wl_ref, bl_ref,
                      o_ref, *, n_mid, first_relu, mid_relu, last_relu):
    # Shapes per grid step:
    #   x_ref : (TM, Fin)            wf_ref: (Fin, Ph) bf16   bf_ref: (1, Ph) f32
    #   wm_ref: (Lm, Ph, Ph) bf16    bm_ref: (Lm, 1, Ph) f32
    #   wl_ref: (Ph, Fout) bf16      bl_ref: (1, Fout) f32    o_ref: (TM, Fout)
    # bf16 operands feed the MXU at full rate; accumulation and the bias/ReLU
    # epilogue stay in f32 (f32 VPU work is free filler under the MXU slot).
    h = jnp.dot(x_ref[...].astype(jnp.bfloat16), wf_ref[...],
                preferred_element_type=jnp.float32)
    h = h + bf_ref[...]
    if first_relu:
        h = jnp.maximum(h, 0.0)

    if n_mid > 0:
        def body(l, h):
            hn = jnp.dot(h.astype(jnp.bfloat16), wm_ref[l],
                         preferred_element_type=jnp.float32)
            hn = hn + bm_ref[l]
            return jnp.maximum(hn, 0.0) if mid_relu else hn
        # fori_loop keeps exactly one live activation buffer for deep nets;
        # unroll shallow nets for scheduler visibility.
        h = jax.lax.fori_loop(0, n_mid, body, h, unroll=(n_mid <= 8))

    h = jnp.dot(h.astype(jnp.bfloat16), wl_ref[...],
                preferred_element_type=jnp.float32)
    h = h + bl_ref[...]
    if last_relu:
        h = jnp.maximum(h, 0.0)
    o_ref[...] = h.astype(o_ref.dtype)


# ---------------------------------------------------------------------------
# Parameter init (matches PyTorch FCBlock init) and one-time packing
# ---------------------------------------------------------------------------
def init_fcblock_params(key, hidden_ch, num_hidden_layers, in_features,
                        out_features, outermost_linear=False):
    """kaiming_normal_(fan_in, relu) weights (out, in); nn.Linear-style bias."""
    dims = [in_features] + [hidden_ch] * (num_hidden_layers + 1) + [out_features]
    params = []
    for i in range(len(dims) - 1):
        fan_in, fan_out = dims[i], dims[i + 1]
        key, kw, kb = jax.random.split(key, 3)
        w = jax.random.normal(kw, (fan_out, fan_in), jnp.float32) * jnp.sqrt(
            2.0 / fan_in)
        bound = 1.0 / jnp.sqrt(fan_in)
        b = jax.random.uniform(kb, (fan_out,), jnp.float32, -bound, bound)
        is_last = (i == len(dims) - 2)
        apply_relu = not (is_last and outermost_linear)
        params.append((w, b, apply_relu))
    return params


def pack_fcblock_params(params, *, lane=128, weight_dtype=jnp.bfloat16):
    """Pre-transpose / pad / cast all layer params once (hoisted out of forward).

    Only the hidden width is padded to a multiple of `lane`; the skinny
    first/last layers keep their real in/out feature widths.  Zero padding of
    the hidden width is inert (zero weight cols -> zero padded activations,
    ReLU(0)=0, zero weight rows consume them).  Biases stay f32 (epilogue runs
    in f32; important on v5e which has no bf16 VPU path).
    """
    in_features = params[0][0].shape[1]
    hidden = params[0][0].shape[0]
    out_features = params[-1][0].shape[0]
    ph = _round_up(hidden, lane)

    w0, b0, relu0 = params[0]
    wl_, bl_, relu_l = params[-1]
    mids = params[1:-1]
    n_mid = len(mids)
    mid_relu = all(r for _, _, r in mids) if mids else True
    assert all(r == mid_relu for _, _, r in mids)

    w_first = jnp.zeros((in_features, ph), weight_dtype)
    w_first = w_first.at[:, :hidden].set(jnp.transpose(w0).astype(weight_dtype))
    b_first = jnp.zeros((1, ph), jnp.float32).at[0, :hidden].set(b0)

    lm = max(n_mid, 1)  # keep a dummy (1, ph, ph) slab so the kernel signature is static
    w_mid = jnp.zeros((lm, ph, ph), weight_dtype)
    b_mid = jnp.zeros((lm, 1, ph), jnp.float32)
    for l, (w, b, _) in enumerate(mids):
        w_mid = w_mid.at[l, :hidden, :hidden].set(
            jnp.transpose(w).astype(weight_dtype))
        b_mid = b_mid.at[l, 0, :hidden].set(b)

    w_last = jnp.zeros((ph, out_features), weight_dtype)
    w_last = w_last.at[:hidden, :].set(jnp.transpose(wl_).astype(weight_dtype))
    b_last = bl_.reshape(1, out_features).astype(jnp.float32)

    meta = dict(in_features=in_features, out_features=out_features,
                hidden=hidden, ph=ph, n_mid=n_mid,
                first_relu=bool(relu0), mid_relu=bool(mid_relu),
                last_relu=bool(relu_l))
    return dict(w_first=w_first, b_first=b_first, w_mid=w_mid, b_mid=b_mid,
                w_last=w_last, b_last=b_last, meta=meta)


# ---------------------------------------------------------------------------
# Row tiling policy
# ---------------------------------------------------------------------------
def _choose_row_tiling(m, *, tm_max=1024, target_tiles=8, min_tiles=2):
    """MXU-friendly row tile; >= min_tiles grid steps (v7x megacore) whenever m
    allows, ~target_tiles steps so the activation stream is pipelined."""
    tm = max(8, min(tm_max, _round_up(pl.cdiv(m, target_tiles), 8)))
    for g in (256, 128):          # snap large tiles to an MXU-friendly granule
        if tm >= g:
            tm = (tm // g) * g
            break
    while tm > 8 and pl.cdiv(m, tm) < min_tiles:
        tm = max(8, _round_up(tm // 2, 8))
    return tm, _round_up(m, tm)


# ---------------------------------------------------------------------------
# Forward: single fused pallas_call, row-tiled grid, resident bf16 weights
# ---------------------------------------------------------------------------
def fcblock_forward(x, packed, *, tm_max=1024):
    """x: (..., in_features) -> (..., out_features), caller dtype preserved."""
    meta = packed["meta"]
    fin, fout, ph, n_mid = (meta["in_features"], meta["out_features"],
                            meta["ph"], meta["n_mid"])
    w_first, b_first = packed["w_first"], packed["b_first"]
    w_mid, b_mid = packed["w_mid"], packed["b_mid"]
    w_last, b_last = packed["w_last"], packed["b_last"]
    lm = w_mid.shape[0]

    lead = x.shape[:-1]
    assert x.shape[-1] == fin
    xr = x.reshape(-1, fin)
    m = xr.shape[0]
    tm, m_pad = _choose_row_tiling(m, tm_max=tm_max)
    if m_pad != m:
        xr = jnp.pad(xr, ((0, m_pad - m), (0, 0)))   # tiny: rows only, real width
    grid = (m_pad // tm,)
    out_dtype = x.dtype
    out_isz = jnp.dtype(out_dtype).itemsize

    kernel = functools.partial(
        _fused_mlp_kernel, n_mid=n_mid, first_relu=meta["first_relu"],
        mid_relu=meta["mid_relu"], last_relu=meta["last_relu"])

    param_bytes = int(
        w_first.size * w_first.dtype.itemsize +
        w_mid.size * w_mid.dtype.itemsize +
        w_last.size * w_last.dtype.itemsize +
        b_first.size * 4 + b_mid.size * 4 + b_last.size * 4)

    # Advisory cost estimate: lets XLA overlap the kernel with surrounding glue.
    flops = 2 * m_pad * (fin * ph + n_mid * ph * ph + ph * fout)
    bytes_accessed = int(xr.size * xr.dtype.itemsize +
                         m_pad * fout * out_isz + param_bytes)
    cost = pl.CostEstimate(flops=flops, transcendentals=0,
                           bytes_accessed=bytes_accessed)

    # VMEM cap per generation (~96 MiB usable on v5e/v6e, ~48 MiB on v7x).
    try:
        vmem_cap = int(pltpu.get_tpu_info().vmem_capacity_bytes)
    except Exception:
        vmem_cap = 64 << 20   # conservative (v7x-sized) fallback

    def run(single_buffer_weights):
        def resident(shape, idx):
            if single_buffer_weights:
                # constant index_map -> block never changes; one buffer suffices
                return pl.BlockSpec(shape, idx, pipeline_mode=pl.Buffered(1))
            return pl.BlockSpec(shape, idx)

        wb = 1 if single_buffer_weights else 2
        vmem_need = (wb * param_bytes
                     + 2 * tm * fin * xr.dtype.itemsize     # streamed x tiles
                     + 2 * tm * fout * out_isz              # streamed out tiles
                     + 6 * tm * ph * 4                      # live f32/bf16 activations
                     + (2 << 20))                           # headroom
        vmem_limit = int(min(max(vmem_need, 16 << 20), (vmem_cap * 3) // 4))

        fn = pl.pallas_call(
            kernel,
            out_shape=jax.ShapeDtypeStruct((m_pad, fout), out_dtype),
            grid=grid,
            in_specs=[
                pl.BlockSpec((tm, fin), lambda i: (i, 0)),      # streamed rows
                resident((fin, ph), lambda i: (0, 0)),          # w_first
                resident((1, ph), lambda i: (0, 0)),            # b_first
                resident((lm, ph, ph), lambda i: (0, 0, 0)),    # w_mid stack
                resident((lm, 1, ph), lambda i: (0, 0, 0)),     # b_mid stack
                resident((ph, fout), lambda i: (0, 0)),         # w_last
                resident((1, fout), lambda i: (0, 0)),          # b_last
            ],
            out_specs=pl.BlockSpec((tm, fout), lambda i: (i, 0)),
            compiler_params=pltpu.CompilerParams(
                dimension_semantics=("parallel",),              # megacore over rows
                vmem_limit_bytes=vmem_limit),
            cost_estimate=cost,
        )
        out = fn(xr, w_first, b_first, w_mid, b_mid, w_last, b_last)
        return jax.block_until_ready(out)

    try:
        out_p = run(True)
    except Exception:
        # Some JAX versions may reject pipeline_mode=pl.Buffered(1); fall back
        # to default (double-buffered) resident weights.
        out_p = run(False)

    return out_p[:m].reshape(*lead, fout)


# ---------------------------------------------------------------------------
if __name__ == "__main__":
    key = jax.random.PRNGKey(0)

    # FCBlock config (small, matches the module's forward semantics)
    hidden_ch = 32
    num_hidden_layers = 2
    in_features = 4
    out_features = 4
    outermost_linear = False   # FCBlock default -> final layer also gets ReLU

    kx, kp = jax.random.split(key)
    # Input: (batch=2, seq=8, in_features=4), channels-last like PyTorch usage
    x = jax.random.normal(kx, (2, 8, in_features), jnp.float32)

    params = init_fcblock_params(kp, hidden_ch, num_hidden_layers,
                                 in_features, out_features, outermost_linear)
    packed = pack_fcblock_params(params)  # transpose/pad/cast hoisted out of forward

    out = fcblock_forward(x, packed)
    out = jax.block_until_ready(out)

    # Pure-JAX reference mirroring the kernel math (bf16 matmul operands,
    # f32 accumulation, f32 bias/ReLU epilogue).
    ref = x.reshape(-1, in_features).astype(jnp.float32)
    for w, b, apply_relu in params:
        ref = jnp.dot(ref.astype(jnp.bfloat16),
                      jnp.transpose(w).astype(jnp.bfloat16),
                      preferred_element_type=jnp.float32) + b
        if apply_relu:
            ref = jnp.maximum(ref, 0.0)
    ref = ref.reshape(2, 8, out_features)

    assert out.shape == (2, 8, out_features)
    max_err = float(jnp.max(jnp.abs(out - ref)))
    assert jnp.allclose(out, ref, atol=1e-2, rtol=1e-2), max_err

    print("KERNEL_OK")
</pallas_src>

<mosaic_0001>
module attributes {stable_mosaic.version = 11 : i64} {
  func.func @_fused_mlp_kernel(%arg0: i32, %arg1: memref<8x4xf32, #tpu.memory_space<vmem>>, %arg2: memref<4x128xbf16, #tpu.memory_space<vmem>>, %arg3: memref<1x128xf32, #tpu.memory_space<vmem>>, %arg4: memref<2x128x128xbf16, #tpu.memory_space<vmem>>, %arg5: memref<2x1x128xf32, #tpu.memory_space<vmem>>, %arg6: memref<128x4xbf16, #tpu.memory_space<vmem>>, %arg7: memref<1x4xf32, #tpu.memory_space<vmem>>, %arg8: memref<8x4xf32, #tpu.memory_space<vmem>>) attributes {dimension_semantics = [#tpu.dimension_semantics<parallel>], iteration_bounds = array<i64: 2>, scalar_prefetch = 0 : i64, scratch_operands = 0 : i64, tpu.core_type = #tpu.core_type<tc>, window_params = [{transform_indices = @transform_0, window_bounds = array<i64: 8, 4>}, {pipeline_mode = #tpu.pipeline_mode<synchronous>, transform_indices = @transform_1, window_bounds = array<i64: 4, 128>}, {pipeline_mode = #tpu.pipeline_mode<synchronous>, transform_indices = @transform_2, window_bounds = array<i64: 1, 128>}, {pipeline_mode = #tpu.pipeline_mode<synchronous>, transform_indices = @transform_3, window_bounds = array<i64: 2, 128, 128>}, {pipeline_mode = #tpu.pipeline_mode<synchronous>, transform_indices = @transform_4, window_bounds = array<i64: 2, 1, 128>}, {pipeline_mode = #tpu.pipeline_mode<synchronous>, transform_indices = @transform_5, window_bounds = array<i64: 128, 4>}, {pipeline_mode = #tpu.pipeline_mode<synchronous>, transform_indices = @transform_6, window_bounds = array<i64: 1, 4>}, {transform_indices = @transform_7, window_bounds = array<i64: 8, 4>}]} {
    %c0 = arith.constant 0 : index
    %c0_0 = arith.constant 0 : index
    %0 = vector.load %arg1[%c0, %c0_0] : memref<8x4xf32, #tpu.memory_space<vmem>>, vector<8x4xf32>
    %1 = arith.truncf %0 : vector<8x4xf32> to vector<8x4xbf16>
    %c0_1 = arith.constant 0 : index
    %c0_2 = arith.constant 0 : index
    %2 = vector.load %arg2[%c0_1, %c0_2] : memref<4x128xbf16, #tpu.memory_space<vmem>>, vector<4x128xbf16>
    %cst = arith.constant dense<0.000000e+00> : vector<8x128xf32>
    %3 = tpu.matmul %1, %2, %cst {dimension_numbers = #tpu.dot_dimension_numbers<[1], [0], [0], [1], [0, 0, 1, 1], [], []>} : vector<8x4xbf16>, vector<4x128xbf16>, vector<8x128xf32> -> vector<8x128xf32>
    %c0_3 = arith.constant 0 : index
    %c0_4 = arith.constant 0 : index
    %4 = vector.load %arg3[%c0_3, %c0_4] : memref<1x128xf32, #tpu.memory_space<vmem>>, vector<1x128xf32>
    %5 = vector.broadcast %4 : vector<1x128xf32> to vector<8x128xf32>
    %6 = arith.addf %3, %5 : vector<8x128xf32>
    %cst_5 = arith.constant 0.000000e+00 : f32
    %7 = vector.broadcast %cst_5 : f32 to vector<8x128xf32>
    %8 = arith.maximumf %6, %7 : vector<8x128xf32>
    %c0_i32 = arith.constant 0 : i32
    %9 = arith.truncf %8 : vector<8x128xf32> to vector<8x128xbf16>
    %10 = arith.index_cast %c0_i32 : i32 to index
    %c0_6 = arith.constant 0 : index
    %c0_7 = arith.constant 0 : index
    %11 = vector.load %arg4[%10, %c0_6, %c0_7] : memref<2x128x128xbf16, #tpu.memory_space<vmem>>, vector<1x128x128xbf16>
    %12 = vector.shape_cast %11 : vector<1x128x128xbf16> to vector<128x128xbf16>
    %cst_8 = arith.constant dense<0.000000e+00> : vector<8x128xf32>
    %13 = tpu.matmul %9, %12, %cst_8 {dimension_numbers = #tpu.dot_dimension_numbers<[1], [0], [0], [1], [0, 0, 1, 1], [], []>} : vector<8x128xbf16>, vector<128x128xbf16>, vector<8x128xf32> -> vector<8x128xf32>
    %14 = arith.index_cast %c0_i32 : i32 to index
    %c0_9 = arith.constant 0 : index
    %c0_10 = arith.constant 0 : index
    %15 = vector.load %arg5[%14, %c0_9, %c0_10] : memref<2x1x128xf32, #tpu.memory_space<vmem>>, vector<1x1x128xf32>
    %16 = vector.shape_cast %15 : vector<1x1x128xf32> to vector<1x128xf32>
    %17 = vector.broadcast %16 : vector<1x128xf32> to vector<8x128xf32>
    %18 = arith.addf %13, %17 : vector<8x128xf32>
    %cst_11 = arith.constant 0.000000e+00 : f32
    %19 = vector.broadcast %cst_11 : f32 to vector<8x128xf32>
    %20 = arith.maximumf %18, %19 : vector<8x128xf32>
    %c1_i32 = arith.constant 1 : i32
    %21 = arith.truncf %20 : vector<8x128xf32> to vector<8x128xbf16>
    %22 = arith.index_cast %c1_i32 : i32 to index
    %c0_12 = arith.constant 0 : index
    %c0_13 = arith.constant 0 : index
    %23 = vector.load %arg4[%22, %c0_12, %c0_13] : memref<2x128x128xbf16, #tpu.memory_space<vmem>>, vector<1x128x128xbf16>
    %24 = vector.shape_cast %23 : vector<1x128x128xbf16> to vector<128x128xbf16>
    %cst_14 = arith.constant dense<0.000000e+00> : vector<8x128xf32>
    %25 = tpu.matmul %21, %24, %cst_14 {dimension_numbers = #tpu.dot_dimension_numbers<[1], [0], [0], [1], [0, 0, 1, 1], [], []>} : vector<8x128xbf16>, vector<128x128xbf16>, vector<8x128xf32> -> vector<8x128xf32>
    %26 = arith.index_cast %c1_i32 : i32 to index
    %c0_15 = arith.constant 0 : index
    %c0_16 = arith.constant 0 : index
    %27 = vector.load %arg5[%26, %c0_15, %c0_16] : memref<2x1x128xf32, #tpu.memory_space<vmem>>, vector<1x1x128xf32>
    %28 = vector.shape_cast %27 : vector<1x1x128xf32> to vector<1x128xf32>
    %29 = vector.broadcast %28 : vector<1x128xf32> to vector<8x128xf32>
    %30 = arith.addf %25, %29 : vector<8x128xf32>
    %cst_17 = arith.constant 0.000000e+00 : f32
    %31 = vector.broadcast %cst_17 : f32 to vector<8x128xf32>
    %32 = arith.maximumf %30, %31 : vector<8x128xf32>
    %c2_i32 = arith.constant 2 : i32
    %33 = arith.truncf %32 : vector<8x128xf32> to vector<8x128xbf16>
    %c0_18 = arith.constant 0 : index
    %c0_19 = arith.constant 0 : index
    %34 = vector.load %arg6[%c0_18, %c0_19] : memref<128x4xbf16, #tpu.memory_space<vmem>>, vector<128x4xbf16>
    %cst_20 = arith.constant dense<0.000000e+00> : vector<8x4xf32>
    %35 = tpu.matmul %33, %34, %cst_20 {dimension_numbers = #tpu.dot_dimension_numbers<[1], [0], [0], [1], [0, 0, 1, 1], [], []>} : vector<8x128xbf16>, vector<128x4xbf16>, vector<8x4xf32> -> vector<8x4xf32>
    %c0_21 = arith.constant 0 : index
    %c0_22 = arith.constant 0 : index
    %36 = vector.load %arg7[%c0_21, %c0_22] : memref<1x4xf32, #tpu.memory_space<vmem>>, vector<1x4xf32>
    %37 = vector.broadcast %36 : vector<1x4xf32> to vector<8x4xf32>
    %38 = arith.addf %35, %37 : vector<8x4xf32>
    %cst_23 = arith.constant 0.000000e+00 : f32
    %39 = vector.broadcast %cst_23 : f32 to vector<8x4xf32>
    %40 = arith.maximumf %38, %39 : vector<8x4xf32>
    %c0_24 = arith.constant 0 : index
    %c0_25 = arith.constant 0 : index
    %41 = vector.load %arg8[%c0_24, %c0_25] : memref<8x4xf32, #tpu.memory_space<vmem>>, vector<8x4xf32>
    tpu.vector_store %arg8[%c0_24, %c0_25], %40 {strides = array<i32>} : memref<8x4xf32, #tpu.memory_space<vmem>>, vector<8x4xf32>,
    return
  }
  func.func @transform_0(%arg0: i32) -> (i32, i32) {
    %c0_i32 = arith.constant 0 : i32
    %c0_i32_0 = arith.constant 0 : i32
    return %arg0, %c0_i32 : i32, i32
  }
  func.func @transform_1(%arg0: i32) -> (i32, i32) {
    %c0_i32 = arith.constant 0 : i32
    %c0_i32_0 = arith.constant 0 : i32
    %c0_i32_1 = arith.constant 0 : i32
    return %c0_i32, %c0_i32_0 : i32, i32
  }
  func.func @transform_2(%arg0: i32) -> (i32, i32) {
    %c0_i32 = arith.constant 0 : i32
    %c0_i32_0 = arith.constant 0 : i32
    %c0_i32_1 = arith.constant 0 : i32
    return %c0_i32, %c0_i32_0 : i32, i32
  }
  func.func @transform_3(%arg0: i32) -> (i32, i32, i32) {
    %c0_i32 = arith.constant 0 : i32
    %c0_i32_0 = arith.constant 0 : i32
    %c0_i32_1 = arith.constant 0 : i32
    %c0_i32_2 = arith.constant 0 : i32
    return %c0_i32, %c0_i32_0, %c0_i32_1 : i32, i32, i32
  }
  func.func @transform_4(%arg0: i32) -> (i32, i32, i32) {
    %c0_i32 = arith.constant 0 : i32
    %c0_i32_0 = arith.constant 0 : i32
    %c0_i32_1 = arith.constant 0 : i32
    %c0_i32_2 = arith.constant 0 : i32
    return %c0_i32, %c0_i32_0, %c0_i32_1 : i32, i32, i32
  }
  func.func @transform_5(%arg0: i32) -> (i32, i32) {
    %c0_i32 = arith.constant 0 : i32
    %c0_i32_0 = arith.constant 0 : i32
    %c0_i32_1 = arith.constant 0 : i32
    return %c0_i32, %c0_i32_0 : i32, i32
  }
  func.func @transform_6(%arg0: i32) -> (i32, i32) {
    %c0_i32 = arith.constant 0 : i32
    %c0_i32_0 = arith.constant 0 : i32
    %c0_i32_1 = arith.constant 0 : i32
    return %c0_i32, %c0_i32_0 : i32, i32
  }
  func.func @transform_7(%arg0: i32) -> (i32, i32) {
    %c0_i32 = arith.constant 0 : i32
    %c0_i32_0 = arith.constant 0 : i32
    return %arg0, %c0_i32 : i32, i32
  }
}

module attributes {stable_mosaic.version = 11 : i64} {
  func.func @_fused_mlp_kernel(%arg0: i32, %arg1: memref<8x4xf32, #tpu.memory_space<vmem>>, %arg2: memref<4x128xbf16, #tpu.memory_space<vmem>>, %arg3: memref<1x128xf32, #tpu.memory_space<vmem>>, %arg4: memref<2x128x128xbf16, #tpu.memory_space<vmem>>, %arg5: memref<2x1x128xf32, #tpu.memory_space<vmem>>, %arg6: memref<128x4xbf16, #tpu.memory_space<vmem>>, %arg7: memref<1x4xf32, #tpu.memory_space<vmem>>, %arg8: memref<8x4xf32, #tpu.memory_space<vmem>>) attributes {dimension_semantics = [#tpu.dimension_semantics<parallel>], iteration_bounds = array<i64: 2>, scalar_prefetch = 0 : i64, scratch_operands = 0 : i64, tpu.core_type = #tpu.core_type<tc>, window_params = [{transform_indices = @transform_0, window_bounds = array<i64: 8, 4>}, {pipeline_mode = #tpu.pipeline_mode<synchronous>, transform_indices = @transform_1, window_bounds = array<i64: 4, 128>}, {pipeline_mode = #tpu.pipeline_mode<synchronous>, transform_indices = @transform_2, window_bounds = array<i64: 1, 128>}, {pipeline_mode = #tpu.pipeline_mode<synchronous>, transform_indices = @transform_3, window_bounds = array<i64: 2, 128, 128>}, {pipeline_mode = #tpu.pipeline_mode<synchronous>, transform_indices = @transform_4, window_bounds = array<i64: 2, 1, 128>}, {pipeline_mode = #tpu.pipeline_mode<synchronous>, transform_indices = @transform_5, window_bounds = array<i64: 128, 4>}, {pipeline_mode = #tpu.pipeline_mode<synchronous>, transform_indices = @transform_6, window_bounds = array<i64: 1, 4>}, {transform_indices = @transform_7, window_bounds = array<i64: 8, 4>}]} {
    %c0 = arith.constant 0 : index
    %c0_0 = arith.constant 0 : index
    %0 = vector.load %arg1[%c0, %c0_0] : memref<8x4xf32, #tpu.memory_space<vmem>>, vector<8x4xf32>
    %1 = arith.truncf %0 : vector<8x4xf32> to vector<8x4xbf16>
    %c0_1 = arith.constant 0 : index
    %c0_2 = arith.constant 0 : index
    %2 = vector.load %arg2[%c0_1, %c0_2] : memref<4x128xbf16, #tpu.memory_space<vmem>>, vector<4x128xbf16>
    %cst = arith.constant dense<0.000000e+00> : vector<8x128xf32>
    %3 = tpu.matmul %1, %2, %cst {dimension_numbers = #tpu.dot_dimension_numbers<[1], [0], [0], [1], [0, 0, 1, 1], [], []>} : vector<8x4xbf16>, vector<4x128xbf16>, vector<8x128xf32> -> vector<8x128xf32>
    %c0_3 = arith.constant 0 : index
    %c0_4 = arith.constant 0 : index
    %4 = vector.load %arg3[%c0_3, %c0_4] : memref<1x128xf32, #tpu.memory_space<vmem>>, vector<1x128xf32>
    %5 = vector.broadcast %4 : vector<1x128xf32> to vector<8x128xf32>
    %6 = arith.addf %3, %5 : vector<8x128xf32>
    %cst_5 = arith.constant 0.000000e+00 : f32
    %7 = vector.broadcast %cst_5 : f32 to vector<8x128xf32>
    %8 = arith.maximumf %6, %7 : vector<8x128xf32>
    %c0_i32 = arith.constant 0 : i32
    %9 = arith.truncf %8 : vector<8x128xf32> to vector<8x128xbf16>
    %10 = arith.index_cast %c0_i32 : i32 to index
    %c0_6 = arith.constant 0 : index
    %c0_7 = arith.constant 0 : index
    %11 = vector.load %arg4[%10, %c0_6, %c0_7] : memref<2x128x128xbf16, #tpu.memory_space<vmem>>, vector<1x128x128xbf16>
    %12 = vector.shape_cast %11 : vector<1x128x128xbf16> to vector<128x128xbf16>
    %cst_8 = arith.constant dense<0.000000e+00> : vector<8x128xf32>
    %13 = tpu.matmul %9, %12, %cst_8 {dimension_numbers = #tpu.dot_dimension_numbers<[1], [0], [0], [1], [0, 0, 1, 1], [], []>} : vector<8x128xbf16>, vector<128x128xbf16>, vector<8x128xf32> -> vector<8x128xf32>
    %14 = arith.index_cast %c0_i32 : i32 to index
    %c0_9 = arith.constant 0 : index
    %c0_10 = arith.constant 0 : index
    %15 = vector.load %arg5[%14, %c0_9, %c0_10] : memref<2x1x128xf32, #tpu.memory_space<vmem>>, vector<1x1x128xf32>
    %16 = vector.shape_cast %15 : vector<1x1x128xf32> to vector<1x128xf32>
    %17 = vector.broadcast %16 : vector<1x128xf32> to vector<8x128xf32>
    %18 = arith.addf %13, %17 : vector<8x128xf32>
    %cst_11 = arith.constant 0.000000e+00 : f32
    %19 = vector.broadcast %cst_11 : f32 to vector<8x128xf32>
    %20 = arith.maximumf %18, %19 : vector<8x128xf32>
    %c1_i32 = arith.constant 1 : i32
    %21 = arith.truncf %20 : vector<8x128xf32> to vector<8x128xbf16>
    %22 = arith.index_cast %c1_i32 : i32 to index
    %c0_12 = arith.constant 0 : index
    %c0_13 = arith.constant 0 : index
    %23 = vector.load %arg4[%22, %c0_12, %c0_13] : memref<2x128x128xbf16, #tpu.memory_space<vmem>>, vector<1x128x128xbf16>
    %24 = vector.shape_cast %23 : vector<1x128x128xbf16> to vector<128x128xbf16>
    %cst_14 = arith.constant dense<0.000000e+00> : vector<8x128xf32>
    %25 = tpu.matmul %21, %24, %cst_14 {dimension_numbers = #tpu.dot_dimension_numbers<[1], [0], [0], [1], [0, 0, 1, 1], [], []>} : vector<8x128xbf16>, vector<128x128xbf16>, vector<8x128xf32> -> vector<8x128xf32>
    %26 = arith.index_cast %c1_i32 : i32 to index
    %c0_15 = arith.constant 0 : index
    %c0_16 = arith.constant 0 : index
    %27 = vector.load %arg5[%26, %c0_15, %c0_16] : memref<2x1x128xf32, #tpu.memory_space<vmem>>, vector<1x1x128xf32>
    %28 = vector.shape_cast %27 : vector<1x1x128xf32> to vector<1x128xf32>
    %29 = vector.broadcast %28 : vector<1x128xf32> to vector<8x128xf32>
    %30 = arith.addf %25, %29 : vector<8x128xf32>
    %cst_17 = arith.constant 0.000000e+00 : f32
    %31 = vector.broadcast %cst_17 : f32 to vector<8x128xf32>
    %32 = arith.maximumf %30, %31 : vector<8x128xf32>
    %c2_i32 = arith.constant 2 : i32
    %33 = arith.truncf %32 : vector<8x128xf32> to vector<8x128xbf16>
    %c0_18 = arith.constant 0 : index
    %c0_19 = arith.constant 0 : index
    %34 = vector.load %arg6[%c0_18, %c0_19] : memref<128x4xbf16, #tpu.memory_space<vmem>>, vector<128x4xbf16>
    %cst_20 = arith.constant dense<0.000000e+00> : vector<8x4xf32>
    %35 = tpu.matmul %33, %34, %cst_20 {dimension_numbers = #tpu.dot_dimension_numbers<[1], [0], [0], [1], [0, 0, 1, 1], [], []>} : vector<8x128xbf16>, vector<128x4xbf16>, vector<8x4xf32> -> vector<8x4xf32>
    %c0_21 = arith.constant 0 : index
    %c0_22 = arith.constant 0 : index
    %36 = vector.load %arg7[%c0_21, %c0_22] : memref<1x4xf32, #tpu.memory_space<vmem>>, vector<1x4xf32>
    %37 = vector.broadcast %36 : vector<1x4xf32> to vector<8x4xf32>
    %38 = arith.addf %35, %37 : vector<8x4xf32>
    %cst_23 = arith.constant 0.000000e+00 : f32
    %39 = vector.broadcast %cst_23 : f32 to vector<8x4xf32>
    %40 = arith.maximumf %38, %39 : vector<8x4xf32>
    %c0_24 = arith.constant 0 : index
    %c0_25 = arith.constant 0 : index
    %41 = vector.load %arg8[%c0_24, %c0_25] : memref<8x4xf32, #tpu.memory_space<vmem>>, vector<8x4xf32>
    tpu.vector_store %arg8[%c0_24, %c0_25], %40 {strides = array<i32>} : memref<8x4xf32, #tpu.memory_space<vmem>>, vector<8x4xf32>,
    return
  }
  func.func @transform_0(%arg0: i32) -> (i32, i32) {
    %c0_i32 = arith.constant 0 : i32
    %c0_i32_0 = arith.constant 0 : i32
    return %arg0, %c0_i32 : i32, i32
  }
  func.func @transform_1(%arg0: i32) -> (i32, i32) {
    %c0_i32 = arith.constant 0 : i32
    %c0_i32_0 = arith.constant 0 : i32
    %c0_i32_1 = arith.constant 0 : i32
    return %c0_i32, %c0_i32_0 : i32, i32
  }
  func.func @transform_2(%arg0: i32) -> (i32, i32) {
    %c0_i32 = arith.constant 0 : i32
    %c0_i32_0 = arith.constant 0 : i32
    %c0_i32_1 = arith.constant 0 : i32
    return %c0_i32, %c0_i32_0 : i32, i32
  }
  func.func @transform_3(%arg0: i32) -> (i32, i32, i32) {
    %c0_i32 = arith.constant 0 : i32
    %c0_i32_0 = arith.constant 0 : i32
    %c0_i32_1 = arith.constant 0 : i32
    %c0_i32_2 = arith.constant 0 : i32
    return %c0_i32, %c0_i32_0, %c0_i32_1 : i32, i32, i32
  }
  func.func @transform_4(%arg0: i32) -> (i32, i32, i32) {
    %c0_i32 = arith.constant 0 : i32
    %c0_i32_0 = arith.constant 0 : i32
    %c0_i32_1 = arith.constant 0 : i32
    %c0_i32_2 = arith.constant 0 : i32
    return %c0_i32, %c0_i32_0, %c0_i32_1 : i32, i32, i32
  }
  func.func @transform_5(%arg0: i32) -> (i32, i32) {
    %c0_i32 = arith.constant 0 : i32
    %c0_i32_0 = arith.constant 0 : i32
    %c0_i32_1 = arith.constant 0 : i32
    return %c0_i32, %c0_i32_0 : i32, i32
  }
  func.func @transform_6(%arg0: i32) -> (i32, i32) {
    %c0_i32 = arith.constant 0 : i32
    %c0_i32_0 = arith.constant 0 : i32
    %c0_i32_1 = arith.constant 0 : i32
    return %c0_i32, %c0_i32_0 : i32, i32
  }
  func.func @transform_7(%arg0: i32) -> (i32, i32) {
    %c0_i32 = arith.constant 0 : i32
    %c0_i32_0 = arith.constant 0 : i32
    return %arg0, %c0_i32 : i32, i32
  }
}

</mosaic_0001>

<bundles_post_ra>
// kernel: tpu_custom_call.1
= control target key start
LH: loop header
LB: loop body
LE: loop exit
PB: predicated region body
PF: predicated region fallthrough
CT: control target
= control target key end

     0   :  { %12 = vsyncpa [#allocation3], 0  ;;  %s1024_s24 = smov 0   ;;  %s1161_s0 = inlined_call_operand.vmem [shape: f32[16,4], index: 0, kind: input, shape index: {}]   ;;  %s1162_s1 = inlined_call_operand.vmem [shape: bf16[4,128], index: 1, kind: input, shape index: {}]   ;;  %s1163_s2 = inlined_call_operand.vmem [shape: f32[1,128], index: 2, kind: input, shape index: {}]   ;;  %s1164_s3 = inlined_call_operand.hbm [shape: bf16[2,128,128], index: 3, kind: input, shape index: {}]   ;;  %s1165_s4 = inlined_call_operand.vmem [shape: f32[2,1,128], index: 4, kind: input, shape index: {}]   ;;  %s1166_s5 = inlined_call_operand.vmem [shape: bf16[128,4], index: 5, kind: input, shape index: {}]   ;;  %s1167_s6 = inlined_call_operand.vmem [shape: f32[1,4], index: 6, kind: input, shape index: {}]   ;;  %s1168_s7 = inlined_call_operand.vmem [shape: f32[16,4], index: 7, kind: output, shape index: {}]  }
   0x1 LB: > { %s1030_s25 = sadd.s32 4294967295, %s977_s24   ;;  %p758_p0 = scmp.ge.s32.totalorder %s977_s24, 1  ;;  %s977_s24 = sphi %s1024_s24, %s18_s24  }
   0x2   : > { %p201_p1 = scmp.lt.s32.totalorder %s977_s24, 3  ;;  %s979_s26 = smov [#allocation2]  }
   0x3   : > { %s219_s27 = sshll.u32 %s979_s26, 4  ;;  %p1169_p3 = scmp.eq.s32.totalorder %s1030_s25, 0  ;;  %s220_s27 = int_to_ptr.vmem [resolvable:$true] %s219_s27 }
   0x4   : > { %p1034_p2 = pnand %p758_p0, %p201_p1  ;;  %s939_s9 = scalar_lea.hbm %s1164_s3, 2048 }
   0x5   : > { %p940_p6 = scmp.ne.s32.totalorder %s1164_s3, %s939_s9  ;;  %p946_p10 = scmp.lt.u32.totalorder %s939_s9, %s1164_s3 }
   0x6   : > { %s1171_s28 = scalar_select %p1034_p2, 1, 0 }
   0x7   : > { %p896_p4 = pneg %p1034_p2 }
   0x9   : > { %p1043_p5 = pnand %p1169_p3, %p896_p4 }
   0xb   : > { %p941_p7 = pneg %p1043_p5 }
   0xd   : > { %p942_p8 = pnand %p941_p7, %p940_p6 }
   0xf   : > { %p943_p9 = pneg %p942_p8 }
  0x11   : > { %p948_p11 = pnand %p946_p10, %p943_p9 }
  0x13   : > { %951 = shalt.err (!%p948_p11)
}
  0x14   : > { %s952_s14 = scalar_lea.vmem %s220_s27, 2048  ;;  %p960_p1 = scmp.lt.s32.totalorder %s220_s27, %s220_s27 }
  0x15   : > { %p953_p12 = scmp.ne.s32.totalorder %s220_s27, %s952_s14  ;;  %p961_p4 = scmp.lt.s32.totalorder %s952_s14, %s952_s14 }
  0x17   : > { %p955_p13 = pnand %p953_p12, %p941_p7  ;;  %p962_p3 = por %p961_p4, %p960_p1 }
  0x19   : > { %p956_p0 = pneg %p955_p13 }
  0x1b   : > { %p963_p2 = pnand %p962_p3, %p956_p0 }
  0x1d   : > { %966 = shalt.err (!%p963_p2)
}
  0x1e   : > { %s980_s15 = smov 64   ;;  %s981_s16 = smov 4  }
  0x1f   : > { %899 = dma.hbm_to_vmem [thread:$0]  (!%p1043_p5), %s1164_s3, 2048, %s220_s27, [#allocation3], %s980_s15, %s980_s15, %s981_s16  }
  0x20   : > { %p1173_p6 = scmp.ne.s32.totalorder %s1171_s28, 0 }
  0x21   : > { %p1174_p8 = scmp.eq.s32.totalorder (!%p1173_p6), %s1030_s25, 0 }
  0x22   : > { %251 = sbr.rel (%p1173_p6) target bundleno = 921 (0x399), region = 48 }
  0x29   : > { %972 = dma.done.wait (%p1174_p8), [#allocation3], 2048   ;;  %p1175_p7 = pmov %p1174_p8 }
  0x2a   : > { %p281_p2 = scmp.lt.s32.totalorder %s1030_s25, 1  ;;  %v982_v0 = vmov 0.0   ;;  %vm983_vm0 = vmmov 0   ;;  %vm304_vm1 = vcmask 1041408   ;;  %v292_v1 = vld [vmem:[%s1162_s1] sm:$0x3] }
  0x2b   : > { %974 = vsyncadd (%p1175_p7), [#allocation3], 4294965248  ;;  %826 = vmatprep.subr.bf16.mxu0 %v982_v0  ;;  %828 = vmatprep.mubr.msk.bf16.mxu0 %vm983_vm0, %v982_v0  ;;  %v306_v3 = vsel %vm304_vm1, %v292_v1, 0  ;;  %v915_v5 = vld [vmem:[#allocation2] sm:$0xff]   ;;  %vm300_vm2 = vcmask 31744   ;;  %v916_v6 = vld [vmem:[#allocation2 + $0x8] sm:$0xff]  }
  0x2c   : > { %s1177_s25 = smov (!%p281_p2, %s1030_s25), 1  ;;  %832 = vmatprep.subr.bf16.mxu1 %v982_v0  ;;  %848 = vmatprep.mubr.msk.bf16.mxu1 %vm983_vm0, %v982_v0  ;;  %v917_v7 = vld [vmem:[#allocation2 + $0x10] sm:$0xff]   ;;  %v918_v8 = vld [vmem:[#allocation2 + $0x18] sm:$0xff]   ;;  %v919_v9 = vld [vmem:[#allocation2 + $0x20] sm:$0xff]  }
  0x2d   : > { %s763_s19 = sshll.u32 %s1177_s25, 3  ;;  %827 = vmatpush3.bf16.msra.mxu0 %v306_v3  ;;  %833 = vmatpush3.bf16.msra.mxu1 %v915_v5  ;;  %v920_v10 = vld [vmem:[#allocation2 + $0x28] sm:$0xff]   ;;  %v921_v11 = vld [vmem:[#allocation2 + $0x30] sm:$0xff]   ;;  %v922_v12 = vld [vmem:[#allocation2 + $0x38] sm:$0xff]  }
  0x2e   : > { %s284_s22 = scalar_lea.vmem %s1161_s0, %s763_s19  ;;  %852 = vmatprep.subr.bf16.mxu0 %v982_v0  ;;  %834 = vmatprep.subr.bf16.mxu1 %v982_v0  ;;  %v923_v13 = vld [vmem:[#allocation2 + $0x40] sm:$0xff]   ;;  %v924_v14 = vld [vmem:[#allocation2 + $0x48] sm:$0xff]   ;;  %v925_v15 = vld [vmem:[#allocation2 + $0x50] sm:$0xff]   ;;  %s288_s10 = scalar_lea.vmem %s1168_s7, %s763_s19 }
  0x2f   : > { %v290_v2 = vld [vmem:[%s284_s22] sm:$0xff]  ;;  %v926_v16 = vld [vmem:[#allocation2 + $0x58] sm:$0xff]   ;;  %v928_v18 = vld [vmem:[#allocation2 + $0x68] sm:$0xff]  }
  0x30   : > { %v291_v4 = vpack.c.bf16 %v290_v2, %v290_v2  ;;  %v927_v17 = vld [vmem:[#allocation2 + $0x60] sm:$0xff]   ;;  %v929_v27 = vld [vmem:[#allocation2 + $0x70] sm:$0xff]   ;;  %v930_v28 = vld [vmem:[#allocation2 + $0x78] sm:$0xff]  }
  0x31   : > { %835 = vmatpush3.bf16.msra.mxu1 %v916_v6  ;;  %v765_v19 = vld [vmem:[%s1163_s2] ss:$0 sm:$0xff]  ;;  %v932_v30 = vld [vmem:[%s1166_s5 + $0x8] sm:$0xff]   ;;  %v933_v31 = vld [vmem:[%s1166_s5 + $0x10] sm:$0xff]  }
  0x32   : > { %829 = vmatmul.mubr.msk.bf16.vlgmr.msra.gmra.mrb[0].mxu0 %vm300_vm2, %v291_v4  ;;  %836 = vmatprep.subr.bf16.mxu1 %v982_v0  ;;  %v931_v29 = vld [vmem:[%s1166_s5] sm:$0xff]   ;;  %v934_v32 = vld [vmem:[%s1166_s5 + $0x18] sm:$0xff]   ;;  %v936_v34 = vld [vmem:[%s1166_s5 + $0x28] sm:$0xff]  }
  0x33   : > { %868 = vmatprep.mubr.msk.bf16.mxu0 %vm983_vm0, %v982_v0  ;;  %853 = vmatpush3.bf16.msra.mxu0 %v923_v13  ;;  %v935_v33 = vld [vmem:[%s1166_s5 + $0x20] sm:$0xff]   ;;  %v937_v43 = vld [vmem:[%s1166_s5 + $0x30] sm:$0xff]   ;;  %v938_v44 = vld [vmem:[%s1166_s5 + $0x38] sm:$0xff]  }
  0x34   : > { %854 = vmatprep.subr.bf16.mxu0 %v982_v0  ;;  %v767_v35 = vld [vmem:[%s1165_s4] ss:$0 sm:$0xff]  ;;  %v777_v45 = vld [vmem:[%s1165_s4 + $0x1] ss:$0 sm:$0xff] }
  0x35   : > { %837 = vmatpush3.bf16.msra.mxu1 %v917_v7  ;;  %v786_v53 = vld [vmem:[%s1167_s6] ss:$0 sm:$0xff] }
  0x36   : > { %838 = vmatprep.subr.bf16.mxu1 %v982_v0 }
  0x37   : > { %855 = vmatpush3.bf16.msra.mxu0 %v924_v14 }
  0x38   : > { %856 = vmatprep.subr.bf16.mxu0 %v982_v0 }
  0x39   : > { %839 = vmatpush3.bf16.msra.mxu1 %v918_v8 }
  0x3a   : > { %840 = vmatprep.subr.bf16.mxu1 %v982_v0 }
  0x3b   : > { %857 = vmatpush3.bf16.msra.mxu0 %v925_v15 }
  0x3c   : > { %858 = vmatprep.subr.bf16.mxu0 %v982_v0 }
  0x3d   : > { %841 = vmatpush3.bf16.msra.mxu1 %v919_v9 }
  0x3e   : > { %842 = vmatprep.subr.bf16.mxu1 %v982_v0 }
  0x3f   : > { %859 = vmatpush3.bf16.msra.mxu0 %v926_v16 }
  0x40   : > { %860 = vmatprep.subr.bf16.mxu0 %v982_v0 }
  0x41   : > { %843 = vmatpush3.bf16.msra.mxu1 %v920_v10 }
  0x42   : > { %844 = vmatprep.subr.bf16.mxu1 %v982_v0 }
  0x43   : > { %861 = vmatpush3.bf16.msra.mxu0 %v927_v17 }
  0x44   : > { %862 = vmatprep.subr.bf16.mxu0 %v982_v0 }
  0x45   : > { %845 = vmatpush3.bf16.msra.mxu1 %v921_v11 }
  0x46   : > { %846 = vmatprep.subr.bf16.mxu1 %v982_v0 }
  0x47   : > { %863 = vmatpush3.bf16.msra.mxu0 %v928_v18 }
  0x48   : > { %864 = vmatprep.subr.bf16.mxu0 %v982_v0 }
  0x49   : > { %847 = vmatpush3.bf16.msra.mxu1 %v922_v12 }
  0x4a   : > { %872 = vmatprep.subr.bf16.mxu1 %v982_v0 }
  0x4b   : > { %865 = vmatpush3.bf16.msra.mxu0 %v929_v27 }
  0x4c   : > { %866 = vmatprep.subr.bf16.mxu0 %v982_v0 }
  0x4f   : > { %867 = vmatpush3.bf16.msra.mxu0 %v930_v28 }
 0x105   : > { %v342_v20 = vpop.f32.mrb[0].mxu0 }
 0x106   : > { %v343_v21 = vadd.f32 %v765_v19, %v342_v20  ;;  %v830_v22 = vpop.f32.mrb[1].mxu0 }
 0x107   : > { %v345_v23 = vpop.f32.mrb[2].mxu0 }
 0x108   : > { %v348_v24 = vmax.f32 %v343_v21, 0.0  ;;  %v831_v25 = vpop.f32.mrb[3].mxu0 }
 0x10a   : > { %v349_v26 = vpack.c.bf16 %v348_v24, %v348_v24 }
 0x10c   : > { %849 = vmatmul.mubr.bf16.vlgmr.msra.gmra.mrb[0].mxu1 %v349_v26 }
 0x10d   : > { %888 = vmatprep.mubr.msk.bf16.mxu1 %vm983_vm0, %v982_v0  ;;  %873 = vmatpush3.bf16.msra.mxu1 %v931_v29 }
 0x10e   : > { %874 = vmatprep.subr.bf16.mxu1 %v982_v0 }
 0x111   : > { %875 = vmatpush3.bf16.msra.mxu1 %v932_v30 }
 0x112   : > { %876 = vmatprep.subr.bf16.mxu1 %v982_v0 }
 0x115   : > { %877 = vmatpush3.bf16.msra.mxu1 %v933_v31 }
 0x116   : > { %878 = vmatprep.subr.bf16.mxu1 %v982_v0 }
 0x119   : > { %879 = vmatpush3.bf16.msra.mxu1 %v934_v32 }
 0x11a   : > { %880 = vmatprep.subr.bf16.mxu1 %v982_v0 }
 0x11d   : > { %881 = vmatpush3.bf16.msra.mxu1 %v935_v33 }
 0x11e   : > { %882 = vmatprep.subr.bf16.mxu1 %v982_v0 }
 0x121   : > { %883 = vmatpush3.bf16.msra.mxu1 %v936_v34 }
 0x122   : > { %884 = vmatprep.subr.bf16.mxu1 %v982_v0 }
 0x125   : > { %885 = vmatpush3.bf16.msra.mxu1 %v937_v43 }
 0x126   : > { %886 = vmatprep.subr.bf16.mxu1 %v982_v0 }
 0x129   : > { %887 = vmatpush3.bf16.msra.mxu1 %v938_v44 }
 0x1df   : > { %v455_v36 = vpop.f32.mrb[0].mxu1 }
 0x1e0   : > { %v456_v37 = vadd.f32 %v767_v35, %v455_v36  ;;  %v850_v38 = vpop.f32.mrb[1].mxu1 }
 0x1e1   : > { %v458_v39 = vpop.f32.mrb[2].mxu1 }
 0x1e2   : > { %v461_v40 = vmax.f32 %v456_v37, 0.0  ;;  %v851_v41 = vpop.f32.mrb[3].mxu1 }
 0x1e4   : > { %v462_v42 = vpack.c.bf16 %v461_v40, %v461_v40 }
 0x1e6   : > { %869 = vmatmul.mubr.bf16.vlgmr.msra.gmra.mrb[4].mxu0 %v462_v42 }
 0x2b9   : > { %v570_v46 = vpop.f32.mrb[4].mxu0 }
 0x2ba   : > { %v571_v47 = vadd.f32 %v777_v45, %v570_v46  ;;  %v870_v48 = vpop.f32.mrb[5].mxu0 }
 0x2bb   : > { %v573_v49 = vpop.f32.mrb[6].mxu0 }
 0x2bc   : > { %v576_v50 = vmax.f32 %v571_v47, 0.0  ;;  %v871_v51 = vpop.f32.mrb[7].mxu0 }
 0x2be   : > { %v577_v52 = vpack.c.bf16 %v576_v50, %v576_v50 }
 0x2c0   : > { %889 = vmatmul.mubr.bf16.vlgmr.msra.gmra.mrb[4].mxu1 %v577_v52 }
 0x393   : > { %v683_v54 = vpop.f32.mrb[4].mxu1 }
 0x394   : > { %v684_v55 = vadd.f32 %v786_v53, %v683_v54  ;;  %v890_v56 = vpop.f32.mrb[5].mxu1 }
 0x395   : > { %v686_v57 = vpop.f32.mrb[6].mxu1 }
 0x396   : > { %v689_v58 = vmax.f32 %v684_v55, 0.0  ;;  %v891_v59 = vpop.f32.mrb[7].mxu1 }
 0x398   : > { %690 = vst.msk [vmem:[%s288_s10] sm:$0xff] %vm300_vm2, %v689_v58 }
 0x399 PF: > { %s18_s24 = sadd.s32 1, %s977_s24  }
 0x39a   : > { %p15_p3 = scmp.ge.s32.totalorder %s18_s24, 4  }
 0x39c   :  { %17 = sbr.rel (!%p15_p3) target bundleno = 1 (0x1), region = 85 }
 0x3a3   :  { %710 = vsyncpa [#allocation3], 1 }
 0x3a4   :  { %712 = vsyncpa [#allocation3 + $0x1], 1 }

// kernel: tpu_custom_call.1
= control target key start
LH: loop header
LB: loop body
LE: loop exit
PB: predicated region body
PF: predicated region fallthrough
CT: control target
= control target key end

     0   :  { %12 = vsyncpa [#allocation3], 0  ;;  %s1024_s24 = smov 0   ;;  %s1161_s0 = inlined_call_operand.vmem [shape: f32[16,4], index: 0, kind: input, shape index: {}]   ;;  %s1162_s1 = inlined_call_operand.vmem [shape: bf16[4,128], index: 1, kind: input, shape index: {}]   ;;  %s1163_s2 = inlined_call_operand.vmem [shape: f32[1,128], index: 2, kind: input, shape index: {}]   ;;  %s1164_s3 = inlined_call_operand.hbm [shape: bf16[2,128,128], index: 3, kind: input, shape index: {}]   ;;  %s1165_s4 = inlined_call_operand.vmem [shape: f32[2,1,128], index: 4, kind: input, shape index: {}]   ;;  %s1166_s5 = inlined_call_operand.vmem [shape: bf16[128,4], index: 5, kind: input, shape index: {}]   ;;  %s1167_s6 = inlined_call_operand.vmem [shape: f32[1,4], index: 6, kind: input, shape index: {}]   ;;  %s1168_s7 = inlined_call_operand.vmem [shape: f32[16,4], index: 7, kind: output, shape index: {}]  }
   0x1 LB: > { %s1030_s25 = sadd.s32 4294967295, %s977_s24   ;;  %p758_p0 = scmp.ge.s32.totalorder %s977_s24, 1  ;;  %s977_s24 = sphi %s1024_s24, %s18_s24  }
   0x2   : > { %p201_p1 = scmp.lt.s32.totalorder %s977_s24, 3  ;;  %s979_s26 = smov [#allocation2]  }
   0x3   : > { %s219_s27 = sshll.u32 %s979_s26, 4  ;;  %p1169_p3 = scmp.eq.s32.totalorder %s1030_s25, 0  ;;  %s220_s27 = int_to_ptr.vmem [resolvable:$true] %s219_s27 }
   0x4   : > { %p1034_p2 = pnand %p758_p0, %p201_p1  ;;  %s939_s9 = scalar_lea.hbm %s1164_s3, 2048 }
   0x5   : > { %p940_p6 = scmp.ne.s32.totalorder %s1164_s3, %s939_s9  ;;  %p946_p10 = scmp.lt.u32.totalorder %s939_s9, %s1164_s3 }
   0x6   : > { %s1171_s28 = scalar_select %p1034_p2, 1, 0 }
   0x7   : > { %p896_p4 = pneg %p1034_p2 }
   0x9   : > { %p1043_p5 = pnand %p1169_p3, %p896_p4 }
   0xb   : > { %p941_p7 = pneg %p1043_p5 }
   0xd   : > { %p942_p8 = pnand %p941_p7, %p940_p6 }
   0xf   : > { %p943_p9 = pneg %p942_p8 }
  0x11   : > { %p948_p11 = pnand %p946_p10, %p943_p9 }
  0x13   : > { %951 = shalt.err (!%p948_p11)
}
  0x14   : > { %s952_s14 = scalar_lea.vmem %s220_s27, 2048  ;;  %p960_p1 = scmp.lt.s32.totalorder %s220_s27, %s220_s27 }
  0x15   : > { %p953_p12 = scmp.ne.s32.totalorder %s220_s27, %s952_s14  ;;  %p961_p4 = scmp.lt.s32.totalorder %s952_s14, %s952_s14 }
  0x17   : > { %p955_p13 = pnand %p953_p12, %p941_p7  ;;  %p962_p3 = por %p961_p4, %p960_p1 }
  0x19   : > { %p956_p0 = pneg %p955_p13 }
  0x1b   : > { %p963_p2 = pnand %p962_p3, %p956_p0 }
  0x1d   : > { %966 = shalt.err (!%p963_p2)
}
  0x1e   : > { %s980_s15 = smov 64   ;;  %s981_s16 = smov 4  }
  0x1f   : > { %899 = dma.hbm_to_vmem [thread:$0]  (!%p1043_p5), %s1164_s3, 2048, %s220_s27, [#allocation3], %s980_s15, %s980_s15, %s981_s16  }
  0x20   : > { %p1173_p6 = scmp.ne.s32.totalorder %s1171_s28, 0 }
  0x21   : > { %p1174_p8 = scmp.eq.s32.totalorder (!%p1173_p6), %s1030_s25, 0 }
  0x22   : > { %251 = sbr.rel (%p1173_p6) target bundleno = 921 (0x399), region = 48 }
  0x29   : > { %972 = dma.done.wait (%p1174_p8), [#allocation3], 2048   ;;  %p1175_p7 = pmov %p1174_p8 }
  0x2a   : > { %p281_p2 = scmp.lt.s32.totalorder %s1030_s25, 1  ;;  %v982_v0 = vmov 0.0   ;;  %vm983_vm0 = vmmov 0   ;;  %vm304_vm1 = vcmask 1041408   ;;  %v292_v1 = vld [vmem:[%s1162_s1] sm:$0x3] }
  0x2b   : > { %974 = vsyncadd (%p1175_p7), [#allocation3], 4294965248  ;;  %826 = vmatprep.subr.bf16.mxu0 %v982_v0  ;;  %828 = vmatprep.mubr.msk.bf16.mxu0 %vm983_vm0, %v982_v0  ;;  %v306_v3 = vsel %vm304_vm1, %v292_v1, 0  ;;  %v915_v5 = vld [vmem:[#allocation2] sm:$0xff]   ;;  %vm300_vm2 = vcmask 31744   ;;  %v916_v6 = vld [vmem:[#allocation2 + $0x8] sm:$0xff]  }
  0x2c   : > { %s1177_s25 = smov (!%p281_p2, %s1030_s25), 1  ;;  %832 = vmatprep.subr.bf16.mxu1 %v982_v0  ;;  %848 = vmatprep.mubr.msk.bf16.mxu1 %vm983_vm0, %v982_v0  ;;  %v917_v7 = vld [vmem:[#allocation2 + $0x10] sm:$0xff]   ;;  %v918_v8 = vld [vmem:[#allocation2 + $0x18] sm:$0xff]   ;;  %v919_v9 = vld [vmem:[#allocation2 + $0x20] sm:$0xff]  }
  0x2d   : > { %s763_s19 = sshll.u32 %s1177_s25, 3  ;;  %827 = vmatpush3.bf16.msra.mxu0 %v306_v3  ;;  %833 = vmatpush3.bf16.msra.mxu1 %v915_v5  ;;  %v920_v10 = vld [vmem:[#allocation2 + $0x28] sm:$0xff]   ;;  %v921_v11 = vld [vmem:[#allocation2 + $0x30] sm:$0xff]   ;;  %v922_v12 = vld [vmem:[#allocation2 + $0x38] sm:$0xff]  }
  0x2e   : > { %s284_s22 = scalar_lea.vmem %s1161_s0, %s763_s19  ;;  %852 = vmatprep.subr.bf16.mxu0 %v982_v0  ;;  %834 = vmatprep.subr.bf16.mxu1 %v982_v0  ;;  %v923_v13 = vld [vmem:[#allocation2 + $0x40] sm:$0xff]   ;;  %v924_v14 = vld [vmem:[#allocation2 + $0x48] sm:$0xff]   ;;  %v925_v15 = vld [vmem:[#allocation2 + $0x50] sm:$0xff]   ;;  %s288_s10 = scalar_lea.vmem %s1168_s7, %s763_s19 }
  0x2f   : > { %v290_v2 = vld [vmem:[%s284_s22] sm:$0xff]  ;;  %v926_v16 = vld [vmem:[#allocation2 + $0x58] sm:$0xff]   ;;  %v928_v18 = vld [vmem:[#allocation2 + $0x68] sm:$0xff]  }
  0x30   : > { %v291_v4 = vpack.c.bf16 %v290_v2, %v290_v2  ;;  %v927_v17 = vld [vmem:[#allocation2 + $0x60] sm:$0xff]   ;;  %v929_v27 = vld [vmem:[#allocation2 + $0x70] sm:$0xff]   ;;  %v930_v28 = vld [vmem:[#allocation2 + $0x78] sm:$0xff]  }
  0x31   : > { %835 = vmatpush3.bf16.msra.mxu1 %v916_v6  ;;  %v765_v19 = vld [vmem:[%s1163_s2] ss:$0 sm:$0xff]  ;;  %v932_v30 = vld [vmem:[%s1166_s5 + $0x8] sm:$0xff]   ;;  %v933_v31 = vld [vmem:[%s1166_s5 + $0x10] sm:$0xff]  }
  0x32   : > { %829 = vmatmul.mubr.msk.bf16.vlgmr.msra.gmra.mrb[0].mxu0 %vm300_vm2, %v291_v4  ;;  %836 = vmatprep.subr.bf16.mxu1 %v982_v0  ;;  %v931_v29 = vld [vmem:[%s1166_s5] sm:$0xff]   ;;  %v934_v32 = vld [vmem:[%s1166_s5 + $0x18] sm:$0xff]   ;;  %v936_v34 = vld [vmem:[%s1166_s5 + $0x28] sm:$0xff]  }
  0x33   : > { %868 = vmatprep.mubr.msk.bf16.mxu0 %vm983_vm0, %v982_v0  ;;  %853 = vmatpush3.bf16.msra.mxu0 %v923_v13  ;;  %v935_v33 = vld [vmem:[%s1166_s5 + $0x20] sm:$0xff]   ;;  %v937_v43 = vld [vmem:[%s1166_s5 + $0x30] sm:$0xff]   ;;  %v938_v44 = vld [vmem:[%s1166_s5 + $0x38] sm:$0xff]  }
  0x34   : > { %854 = vmatprep.subr.bf16.mxu0 %v982_v0  ;;  %v767_v35 = vld [vmem:[%s1165_s4] ss:$0 sm:$0xff]  ;;  %v777_v45 = vld [vmem:[%s1165_s4 + $0x1] ss:$0 sm:$0xff] }
  0x35   : > { %837 = vmatpush3.bf16.msra.mxu1 %v917_v7  ;;  %v786_v53 = vld [vmem:[%s1167_s6] ss:$0 sm:$0xff] }
  0x36   : > { %838 = vmatprep.subr.bf16.mxu1 %v982_v0 }
  0x37   : > { %855 = vmatpush3.bf16.msra.mxu0 %v924_v14 }
  0x38   : > { %856 = vmatprep.subr.bf16.mxu0 %v982_v0 }
  0x39   : > { %839 = vmatpush3.bf16.msra.mxu1 %v918_v8 }
  0x3a   : > { %840 = vmatprep.subr.bf16.mxu1 %v982_v0 }
  0x3b   : > { %857 = vmatpush3.bf16.msra.mxu0 %v925_v15 }
  0x3c   : > { %858 = vmatprep.subr.bf16.mxu0 %v982_v0 }
  0x3d   : > { %841 = vmatpush3.bf16.msra.mxu1 %v919_v9 }
  0x3e   : > { %842 = vmatprep.subr.bf16.mxu1 %v982_v0 }
  0x3f   : > { %859 = vmatpush3.bf16.msra.mxu0 %v926_v16 }
  0x40   : > { %860 = vmatprep.subr.bf16.mxu0 %v982_v0 }
  0x41   : > { %843 = vmatpush3.bf16.msra.mxu1 %v920_v10 }
  0x42   : > { %844 = vmatprep.subr.bf16.mxu1 %v982_v0 }
  0x43   : > { %861 = vmatpush3.bf16.msra.mxu0 %v927_v17 }
  0x44   : > { %862 = vmatprep.subr.bf16.mxu0 %v982_v0 }
  0x45   : > { %845 = vmatpush3.bf16.msra.mxu1 %v921_v11 }
  0x46   : > { %846 = vmatprep.subr.bf16.mxu1 %v982_v0 }
  0x47   : > { %863 = vmatpush3.bf16.msra.mxu0 %v928_v18 }
  0x48   : > { %864 = vmatprep.subr.bf16.mxu0 %v982_v0 }
  0x49   : > { %847 = vmatpush3.bf16.msra.mxu1 %v922_v12 }
  0x4a   : > { %872 = vmatprep.subr.bf16.mxu1 %v982_v0 }
  0x4b   : > { %865 = vmatpush3.bf16.msra.mxu0 %v929_v27 }
  0x4c   : > { %866 = vmatprep.subr.bf16.mxu0 %v982_v0 }
  0x4f   : > { %867 = vmatpush3.bf16.msra.mxu0 %v930_v28 }
 0x105   : > { %v342_v20 = vpop.f32.mrb[0].mxu0 }
 0x106   : > { %v343_v21 = vadd.f32 %v765_v19, %v342_v20  ;;  %v830_v22 = vpop.f32.mrb[1].mxu0 }
 0x107   : > { %v345_v23 = vpop.f32.mrb[2].mxu0 }
 0x108   : > { %v348_v24 = vmax.f32 %v343_v21, 0.0  ;;  %v831_v25 = vpop.f32.mrb[3].mxu0 }
 0x10a   : > { %v349_v26 = vpack.c.bf16 %v348_v24, %v348_v24 }
 0x10c   : > { %849 = vmatmul.mubr.bf16.vlgmr.msra.gmra.mrb[0].mxu1 %v349_v26 }
 0x10d   : > { %888 = vmatprep.mubr.msk.bf16.mxu1 %vm983_vm0, %v982_v0  ;;  %873 = vmatpush3.bf16.msra.mxu1 %v931_v29 }
 0x10e   : > { %874 = vmatprep.subr.bf16.mxu1 %v982_v0 }
 0x111   : > { %875 = vmatpush3.bf16.msra.mxu1 %v932_v30 }
 0x112   : > { %876 = vmatprep.subr.bf16.mxu1 %v982_v0 }
 0x115   : > { %877 = vmatpush3.bf16.msra.mxu1 %v933_v31 }
 0x116   : > { %878 = vmatprep.subr.bf16.mxu1 %v982_v0 }
 0x119   : > { %879 = vmatpush3.bf16.msra.mxu1 %v934_v32 }
 0x11a   : > { %880 = vmatprep.subr.bf16.mxu1 %v982_v0 }
 0x11d   : > { %881 = vmatpush3.bf16.msra.mxu1 %v935_v33 }
 0x11e   : > { %882 = vmatprep.subr.bf16.mxu1 %v982_v0 }
 0x121   : > { %883 = vmatpush3.bf16.msra.mxu1 %v936_v34 }
 0x122   : > { %884 = vmatprep.subr.bf16.mxu1 %v982_v0 }
 0x125   : > { %885 = vmatpush3.bf16.msra.mxu1 %v937_v43 }
 0x126   : > { %886 = vmatprep.subr.bf16.mxu1 %v982_v0 }
 0x129   : > { %887 = vmatpush3.bf16.msra.mxu1 %v938_v44 }
 0x1df   : > { %v455_v36 = vpop.f32.mrb[0].mxu1 }
 0x1e0   : > { %v456_v37 = vadd.f32 %v767_v35, %v455_v36  ;;  %v850_v38 = vpop.f32.mrb[1].mxu1 }
 0x1e1   : > { %v458_v39 = vpop.f32.mrb[2].mxu1 }
 0x1e2   : > { %v461_v40 = vmax.f32 %v456_v37, 0.0  ;;  %v851_v41 = vpop.f32.mrb[3].mxu1 }
 0x1e4   : > { %v462_v42 = vpack.c.bf16 %v461_v40, %v461_v40 }
 0x1e6   : > { %869 = vmatmul.mubr.bf16.vlgmr.msra.gmra.mrb[4].mxu0 %v462_v42 }
 0x2b9   : > { %v570_v46 = vpop.f32.mrb[4].mxu0 }
 0x2ba   : > { %v571_v47 = vadd.f32 %v777_v45, %v570_v46  ;;  %v870_v48 = vpop.f32.mrb[5].mxu0 }
 0x2bb   : > { %v573_v49 = vpop.f32.mrb[6].mxu0 }
 0x2bc   : > { %v576_v50 = vmax.f32 %v571_v47, 0.0  ;;  %v871_v51 = vpop.f32.mrb[7].mxu0 }
 0x2be   : > { %v577_v52 = vpack.c.bf16 %v576_v50, %v576_v50 }
 0x2c0   : > { %889 = vmatmul.mubr.bf16.vlgmr.msra.gmra.mrb[4].mxu1 %v577_v52 }
 0x393   : > { %v683_v54 = vpop.f32.mrb[4].mxu1 }
 0x394   : > { %v684_v55 = vadd.f32 %v786_v53, %v683_v54  ;;  %v890_v56 = vpop.f32.mrb[5].mxu1 }
 0x395   : > { %v686_v57 = vpop.f32.mrb[6].mxu1 }
 0x396   : > { %v689_v58 = vmax.f32 %v684_v55, 0.0  ;;  %v891_v59 = vpop.f32.mrb[7].mxu1 }
 0x398   : > { %690 = vst.msk [vmem:[%s288_s10] sm:$0xff] %vm300_vm2, %v689_v58 }
 0x399 PF: > { %s18_s24 = sadd.s32 1, %s977_s24  }
 0x39a   : > { %p15_p3 = scmp.ge.s32.totalorder %s18_s24, 4  }
 0x39c   :  { %17 = sbr.rel (!%p15_p3) target bundleno = 1 (0x1), region = 85 }
 0x3a3   :  { %710 = vsyncpa [#allocation3], 1 }
 0x3a4   :  { %712 = vsyncpa [#allocation3 + $0x1], 1 }

</bundles_post_ra>
